<compile_context>
chip_gen: v7x
topology: tpu7x:2x2x1
jax: 0.10.0
libtpu: 0.0.40
codegen_flags: <defaults>
</compile_context>

<pallas_src>
import functools

import jax
import jax.numpy as jnp
from jax.experimental import pallas as pl
from jax.experimental.pallas import tpu as pltpu


def _round_up(x, m):
    return (x + m - 1) // m * m


CONV3_CHUNK = 256   # output-channel chunk for conv3 (matches MXU width on v6e/v7x)


# ---------------------------------------------------------------------------
# Kernel 1: conv1 -> conv2 -> conv3 (chunked, bias/ReLU deferred) -> running max
# ---------------------------------------------------------------------------
def conv_max_kernel(x_ref, w1, b1, w2, b2, w3, g_ref):
    n_idx = pl.program_id(1)
    x = x_ref[0].astype(jnp.float32)                         # (tile_n, K)
    tile_n, kdim = x.shape

    # conv1: contraction depth K (=3) -> K broadcast multiply-adds on the VPU
    # instead of a tiny, badly-shaped 3-deep MXU matmul.
    w1v = w1[...]                                            # (K, 64) f32
    h = x[:, 0:1] * w1v[0:1, :] + b1[...]
    for kk in range(1, kdim):
        h = h + x[:, kk:kk + 1] * w1v[kk:kk + 1, :]
    h = jnp.maximum(h, 0.0)                                  # (tile_n, 64)

    # conv2: bf16 MXU matmul, f32 accumulation, eval-mode BN folded.
    h = jnp.maximum(
        jnp.dot(h.astype(jnp.bfloat16), w2[...],
                preferred_element_type=jnp.float32) + b2[...], 0.0)
    hb = h.astype(jnp.bfloat16)                              # cast once (tile_n, 128)

    # conv3 in CONV3_CHUNK-wide output-channel chunks; bias + ReLU deferred to
    # the FC head (ReLU(max_n(s)+b3) == max_n(ReLU(s+b3))); row-max fused per
    # chunk so only one (tile_n, CONV3_CHUNK) f32 intermediate is live.
    n_out = w3.shape[1]
    chunk_maxes = []
    for c0 in range(0, n_out, CONV3_CHUNK):
        s = jnp.dot(hb, w3[:, c0:c0 + CONV3_CHUNK],
                    preferred_element_type=jnp.float32)      # (tile_n, chunk)
        chunk_maxes.append(jnp.max(s, axis=0, keepdims=True))  # (1, chunk)
    tile_max = jnp.concatenate(chunk_maxes, axis=1)          # (1, n_out)

    @pl.when(n_idx == 0)
    def _():
        g_ref[0] = tile_max

    @pl.when(n_idx != 0)
    def _():
        g_ref[0] = jnp.maximum(g_ref[0], tile_max)


# ---------------------------------------------------------------------------
# Kernel 2: deferred conv3 epilogue + batched FC head (lane-dense output)
# ---------------------------------------------------------------------------
def fc_head_kernel(g_ref, b3, w4, b4, w5, b5, w6, b6, o_ref):
    # deferred conv3 bias + ReLU, now on the tiny (B, 1024) pooled maxima
    g = jnp.maximum(g_ref[...] + b3[...], 0.0).astype(jnp.bfloat16)
    f = jnp.maximum(
        jnp.dot(g, w4[...], preferred_element_type=jnp.float32) + b4[...], 0.0)
    f = jnp.maximum(
        jnp.dot(f.astype(jnp.bfloat16), w5[...],
                preferred_element_type=jnp.float32) + b5[...], 0.0)
    out = jnp.dot(f.astype(jnp.bfloat16), w6[...],
                  preferred_element_type=jnp.float32) + b6[...]
    o_ref[...] = out.astype(o_ref.dtype)


def _const_spec(shape):
    nd = len(shape)
    return pl.BlockSpec(shape, lambda *_, _nd=nd: (0,) * _nd)


# ---------------------------------------------------------------------------
# Wrapper
# ---------------------------------------------------------------------------
def tnet_forward(x, params, k=3, tile_n=1024):
    """x: (B, K, num_points) float32 -> (B, k, k)."""
    B, K, N = x.shape
    assert K == k
    (w1, b1, w2, b2, w3, b3, w4, b4, w5, b5, w6, b6) = params
    c3 = w3.shape[-1]
    assert c3 % CONV3_CHUNK == 0

    # channel-last so every Conv1d(kernel_size=1) is a row-wise matmul.
    xt = jnp.transpose(x, (0, 2, 1)).astype(jnp.float32)     # (B, N, K)

    tn = _round_up(min(tile_n, _round_up(N, 8)), 8)
    n_pad = _round_up(N, tn)
    if n_pad != N:
        # Edge-pad the point axis: duplicated points can never win the max,
        # so the kernel needs no -inf row mask / iota / select at all.
        xt = jnp.pad(xt, ((0, 0), (0, n_pad - N), (0, 0)), mode="edge")
    num_nt = n_pad // tn

    conv_weights = (w1, b1, w2, b2, w3)
    g = pl.pallas_call(
        conv_max_kernel,
        out_shape=jax.ShapeDtypeStruct((B, 1, c3), jnp.float32),
        grid=(B, num_nt),
        in_specs=[pl.BlockSpec((1, tn, K), lambda b, n: (b, n, 0))]
                 + [_const_spec(p.shape) for p in conv_weights],
        out_specs=pl.BlockSpec((1, 1, c3), lambda b, n: (b, 0, 0)),
        compiler_params=pltpu.CompilerParams(
            dimension_semantics=("parallel", "arbitrary"),
            vmem_limit_bytes=32 * 1024 * 1024),
    )(xt, *conv_weights)
    g = g.reshape(B, c3)

    fc_weights = (b3, w4, b4, w5, b5, w6, b6)
    out_lanes = w6.shape[-1]
    out = pl.pallas_call(
        fc_head_kernel,
        out_shape=jax.ShapeDtypeStruct((B, out_lanes), jnp.float32),
        grid=(1,),
        in_specs=[_const_spec(g.shape)]
                 + [_const_spec(p.shape) for p in fc_weights],
        out_specs=_const_spec((B, out_lanes)),
        compiler_params=pltpu.CompilerParams(
            dimension_semantics=("arbitrary",)),
    )(g, *fc_weights)

    return out[:, :k * k].reshape(B, k, k)


# ---------------------------------------------------------------------------
# Parameter construction (eval-mode BN folded, bf16 weights, fc6 padded)
# ---------------------------------------------------------------------------
def _fold_bn(w_t, b, gamma, beta, mean, var, eps=1e-5):
    """w_t: (C_in, C_out); eval-mode BatchNorm folded into the GEMM."""
    scale = gamma / jnp.sqrt(var + eps)
    return w_t * scale[None, :], (b - mean) * scale + beta


def init_params(key, k=3, out_lanes=128):
    """Returns (w1,b1,...,w6,b6).  w2..w6 bf16, biases f32, fc6 padded to a
    lane-dense width with the k*k identity folded into its bias."""
    dims = [(k, 64), (64, 128), (128, 1024), (1024, 512), (512, 256), (256, k * k)]
    keys = jax.random.split(key, 6 * 6)
    params = []
    ki = 0
    for layer_idx, (cin, cout) in enumerate(dims):
        w = jax.random.normal(keys[ki], (cin, cout), jnp.float32) / jnp.sqrt(cin); ki += 1
        b = jax.random.normal(keys[ki], (cout,), jnp.float32) * 0.05; ki += 1
        if layer_idx < 5:  # layers followed by BatchNorm
            gamma = 0.5 + jax.random.uniform(keys[ki], (cout,), jnp.float32); ki += 1
            beta = jax.random.normal(keys[ki], (cout,), jnp.float32) * 0.1; ki += 1
            mean = jax.random.normal(keys[ki], (cout,), jnp.float32) * 0.1; ki += 1
            var = 0.5 + jax.random.uniform(keys[ki], (cout,), jnp.float32); ki += 1
            w, b = _fold_bn(w, b, gamma, beta, mean, var)
        else:
            ki += 4
            # fold the identity matrix added after fc6 into its bias
            b = b + jnp.eye(k, dtype=jnp.float32).reshape(-1)
            # pad fc6 to a lane-dense (>=128) output width
            pad = _round_up(max(out_lanes, cout), 128) - cout
            w = jnp.pad(w, ((0, 0), (0, pad)))
            b = jnp.pad(b, ((0, pad),))
        w_dtype = jnp.float32 if layer_idx == 0 else jnp.bfloat16
        params.append(w.astype(w_dtype))
        params.append(b.reshape(1, -1).astype(jnp.float32))
    return tuple(params)


def tnet_reference(x, params, k=3):
    """Pure-JAX reference using the identical (BN-folded, bf16) math, in the
    original torch order (ReLU before max; mathematically equal to the
    kernel's deferred-bias formulation)."""
    (w1, b1, w2, b2, w3, b3, w4, b4, w5, b5, w6, b6) = params
    xt = jnp.transpose(x, (0, 2, 1)).astype(jnp.float32)
    h = jax.nn.relu(xt @ w1 + b1)
    h = jax.nn.relu(jnp.dot(h.astype(jnp.bfloat16), w2,
                            preferred_element_type=jnp.float32) + b2)
    h = jax.nn.relu(jnp.dot(h.astype(jnp.bfloat16), w3,
                            preferred_element_type=jnp.float32) + b3)
    g = jnp.max(h, axis=1)
    f = jax.nn.relu(jnp.dot(g.astype(jnp.bfloat16), w4,
                            preferred_element_type=jnp.float32) + b4)
    f = jax.nn.relu(jnp.dot(f.astype(jnp.bfloat16), w5,
                            preferred_element_type=jnp.float32) + b5)
    out = jnp.dot(f.astype(jnp.bfloat16), w6,
                  preferred_element_type=jnp.float32) + b6
    return out[:, :k * k].reshape(-1, k, k)


if __name__ == "__main__":
    k = 3
    B, N = 2, 20     # small demo shapes; tile_n=8 exercises tiling + edge padding
    key = jax.random.PRNGKey(0)
    k_x, k_p = jax.random.split(key)
    x = jax.random.normal(k_x, (B, k, N), jnp.float32)       # (B, K, num_points)
    params = init_params(k_p, k=k)

    out = tnet_forward(x, params, k=k, tile_n=8)
    out = jax.block_until_ready(out)

    ref = tnet_reference(x, params, k=k)
    assert out.shape == (B, k, k)
    assert jnp.allclose(out, ref, atol=1e-2, rtol=1e-2), "mismatch vs reference"
    print("KERNEL_OK")
</pallas_src>

<mosaic_0001>
module attributes {stable_mosaic.version = 11 : i64} {
  func.func @conv_max_kernel(%arg0: i32, %arg1: i32, %arg2: memref<1x8x3xf32, #tpu.memory_space<vmem>>, %arg3: memref<3x64xf32, #tpu.memory_space<vmem>>, %arg4: memref<1x64xf32, #tpu.memory_space<vmem>>, %arg5: memref<64x128xbf16, #tpu.memory_space<vmem>>, %arg6: memref<1x128xf32, #tpu.memory_space<vmem>>, %arg7: memref<128x1024xbf16, #tpu.memory_space<vmem>>, %arg8: memref<1x1x1024xf32, #tpu.memory_space<vmem>>) attributes {dimension_semantics = [#tpu.dimension_semantics<parallel>, #tpu.dimension_semantics<arbitrary>], iteration_bounds = array<i64: 2, 3>, scalar_prefetch = 0 : i64, scratch_operands = 0 : i64, tpu.core_type = #tpu.core_type<tc>, window_params = [{transform_indices = @transform_0, window_bounds = array<i64: 1, 8, 3>}, {pipeline_mode = #tpu.pipeline_mode<synchronous>, transform_indices = @transform_1, window_bounds = array<i64: 3, 64>}, {pipeline_mode = #tpu.pipeline_mode<synchronous>, transform_indices = @transform_2, window_bounds = array<i64: 1, 64>}, {pipeline_mode = #tpu.pipeline_mode<synchronous>, transform_indices = @transform_3, window_bounds = array<i64: 64, 128>}, {pipeline_mode = #tpu.pipeline_mode<synchronous>, transform_indices = @transform_4, window_bounds = array<i64: 1, 128>}, {pipeline_mode = #tpu.pipeline_mode<synchronous>, transform_indices = @transform_5, window_bounds = array<i64: 128, 1024>}, {transform_indices = @transform_6, window_bounds = array<i64: 1, 1, 1024>}]} {
    %c0 = arith.constant 0 : index
    %c0_0 = arith.constant 0 : index
    %c0_1 = arith.constant 0 : index
    %0 = vector.load %arg2[%c0, %c0_0, %c0_1] : memref<1x8x3xf32, #tpu.memory_space<vmem>>, vector<1x8x3xf32>
    %1 = vector.shape_cast %0 : vector<1x8x3xf32> to vector<8x3xf32>
    %c0_2 = arith.constant 0 : index
    %c0_3 = arith.constant 0 : index
    %2 = vector.load %arg3[%c0_2, %c0_3] : memref<3x64xf32, #tpu.memory_space<vmem>>, vector<3x64xf32>
    %3 = vector.extract_strided_slice %1 {offsets = [0, 0], sizes = [8, 1], strides = [1, 1]} : vector<8x3xf32> to vector<8x1xf32>
    %4 = vector.extract_strided_slice %2 {offsets = [0, 0], sizes = [1, 64], strides = [1, 1]} : vector<3x64xf32> to vector<1x64xf32>
    %5 = vector.broadcast %3 : vector<8x1xf32> to vector<8x64xf32>
    %6 = vector.broadcast %4 : vector<1x64xf32> to vector<8x64xf32>
    %7 = arith.mulf %5, %6 : vector<8x64xf32>
    %c0_4 = arith.constant 0 : index
    %c0_5 = arith.constant 0 : index
    %8 = vector.load %arg4[%c0_4, %c0_5] : memref<1x64xf32, #tpu.memory_space<vmem>>, vector<1x64xf32>
    %9 = vector.broadcast %8 : vector<1x64xf32> to vector<8x64xf32>
    %10 = arith.addf %7, %9 : vector<8x64xf32>
    %11 = vector.extract_strided_slice %1 {offsets = [0, 1], sizes = [8, 1], strides = [1, 1]} : vector<8x3xf32> to vector<8x1xf32>
    %12 = vector.extract_strided_slice %2 {offsets = [1, 0], sizes = [1, 64], strides = [1, 1]} : vector<3x64xf32> to vector<1x64xf32>
    %13 = vector.broadcast %11 : vector<8x1xf32> to vector<8x64xf32>
    %14 = vector.broadcast %12 : vector<1x64xf32> to vector<8x64xf32>
    %15 = arith.mulf %13, %14 : vector<8x64xf32>
    %16 = arith.addf %10, %15 : vector<8x64xf32>
    %17 = vector.extract_strided_slice %1 {offsets = [0, 2], sizes = [8, 1], strides = [1, 1]} : vector<8x3xf32> to vector<8x1xf32>
    %18 = vector.extract_strided_slice %2 {offsets = [2, 0], sizes = [1, 64], strides = [1, 1]} : vector<3x64xf32> to vector<1x64xf32>
    %19 = vector.broadcast %17 : vector<8x1xf32> to vector<8x64xf32>
    %20 = vector.broadcast %18 : vector<1x64xf32> to vector<8x64xf32>
    %21 = arith.mulf %19, %20 : vector<8x64xf32>
    %22 = arith.addf %16, %21 : vector<8x64xf32>
    %cst = arith.constant 0.000000e+00 : f32
    %23 = vector.broadcast %cst : f32 to vector<8x64xf32>
    %24 = arith.maximumf %22, %23 : vector<8x64xf32>
    %25 = arith.truncf %24 : vector<8x64xf32> to vector<8x64xbf16>
    %c0_6 = arith.constant 0 : index
    %c0_7 = arith.constant 0 : index
    %26 = vector.load %arg5[%c0_6, %c0_7] : memref<64x128xbf16, #tpu.memory_space<vmem>>, vector<64x128xbf16>
    %cst_8 = arith.constant dense<0.000000e+00> : vector<8x128xf32>
    %27 = tpu.matmul %25, %26, %cst_8 {dimension_numbers = #tpu.dot_dimension_numbers<[1], [0], [0], [1], [0, 0, 1, 1], [], []>} : vector<8x64xbf16>, vector<64x128xbf16>, vector<8x128xf32> -> vector<8x128xf32>
    %c0_9 = arith.constant 0 : index
    %c0_10 = arith.constant 0 : index
    %28 = vector.load %arg6[%c0_9, %c0_10] : memref<1x128xf32, #tpu.memory_space<vmem>>, vector<1x128xf32>
    %29 = vector.broadcast %28 : vector<1x128xf32> to vector<8x128xf32>
    %30 = arith.addf %27, %29 : vector<8x128xf32>
    %cst_11 = arith.constant 0.000000e+00 : f32
    %31 = vector.broadcast %cst_11 : f32 to vector<8x128xf32>
    %32 = arith.maximumf %30, %31 : vector<8x128xf32>
    %33 = arith.truncf %32 : vector<8x128xf32> to vector<8x128xbf16>
    %c0_12 = arith.constant 0 : index
    %c0_13 = arith.constant 0 : index
    %34 = vector.load %arg7[%c0_12, %c0_13] : memref<128x1024xbf16, #tpu.memory_space<vmem>>, vector<128x256xbf16>
    %cst_14 = arith.constant dense<0.000000e+00> : vector<8x256xf32>
    %35 = tpu.matmul %33, %34, %cst_14 {dimension_numbers = #tpu.dot_dimension_numbers<[1], [0], [0], [1], [0, 0, 1, 1], [], []>} : vector<8x128xbf16>, vector<128x256xbf16>, vector<8x256xf32> -> vector<8x256xf32>
    %cst_15 = arith.constant dense<0xFF800000> : vector<256xf32>
    %36 = vector.multi_reduction <maximumf>, %35, %cst_15 [0] : vector<8x256xf32> to vector<256xf32>
    %37 = vector.shape_cast %36 : vector<256xf32> to vector<1x256xf32>
    %c0_16 = arith.constant 0 : index
    %c256 = arith.constant 256 : index
    %38 = vector.load %arg7[%c0_16, %c256] : memref<128x1024xbf16, #tpu.memory_space<vmem>>, vector<128x256xbf16>
    %cst_17 = arith.constant dense<0.000000e+00> : vector<8x256xf32>
    %39 = tpu.matmul %33, %38, %cst_17 {dimension_numbers = #tpu.dot_dimension_numbers<[1], [0], [0], [1], [0, 0, 1, 1], [], []>} : vector<8x128xbf16>, vector<128x256xbf16>, vector<8x256xf32> -> vector<8x256xf32>
    %cst_18 = arith.constant dense<0xFF800000> : vector<256xf32>
    %40 = vector.multi_reduction <maximumf>, %39, %cst_18 [0] : vector<8x256xf32> to vector<256xf32>
    %41 = vector.shape_cast %40 : vector<256xf32> to vector<1x256xf32>
    %c0_19 = arith.constant 0 : index
    %c512 = arith.constant 512 : index
    %42 = vector.load %arg7[%c0_19, %c512] : memref<128x1024xbf16, #tpu.memory_space<vmem>>, vector<128x256xbf16>
    %cst_20 = arith.constant dense<0.000000e+00> : vector<8x256xf32>
    %43 = tpu.matmul %33, %42, %cst_20 {dimension_numbers = #tpu.dot_dimension_numbers<[1], [0], [0], [1], [0, 0, 1, 1], [], []>} : vector<8x128xbf16>, vector<128x256xbf16>, vector<8x256xf32> -> vector<8x256xf32>
    %cst_21 = arith.constant dense<0xFF800000> : vector<256xf32>
    %44 = vector.multi_reduction <maximumf>, %43, %cst_21 [0] : vector<8x256xf32> to vector<256xf32>
    %45 = vector.shape_cast %44 : vector<256xf32> to vector<1x256xf32>
    %c0_22 = arith.constant 0 : index
    %c768 = arith.constant 768 : index
    %46 = vector.load %arg7[%c0_22, %c768] : memref<128x1024xbf16, #tpu.memory_space<vmem>>, vector<128x256xbf16>
    %cst_23 = arith.constant dense<0.000000e+00> : vector<8x256xf32>
    %47 = tpu.matmul %33, %46, %cst_23 {dimension_numbers = #tpu.dot_dimension_numbers<[1], [0], [0], [1], [0, 0, 1, 1], [], []>} : vector<8x128xbf16>, vector<128x256xbf16>, vector<8x256xf32> -> vector<8x256xf32>
    %cst_24 = arith.constant dense<0xFF800000> : vector<256xf32>
    %48 = vector.multi_reduction <maximumf>, %47, %cst_24 [0] : vector<8x256xf32> to vector<256xf32>
    %49 = vector.shape_cast %48 : vector<256xf32> to vector<1x256xf32>
    %50 = tpu.concatenate %37, %41, %45, %49 in 1 : vector<1x256xf32>, vector<1x256xf32>, vector<1x256xf32>, vector<1x256xf32> -> vector<1x1024xf32>
    %c0_i32 = arith.constant 0 : i32
    %51 = arith.cmpi eq, %arg1, %c0_i32 : i32
    %52 = arith.extui %51 : i1 to i32
    %c0_i32_25 = arith.constant 0 : i32
    %53 = arith.cmpi ne, %52, %c0_i32_25 : i32
    scf.if %53 {
      %c0_28 = arith.constant 0 : index
      %c0_29 = arith.constant 0 : index
      %c0_30 = arith.constant 0 : index
      %57 = vector.load %arg8[%c0_28, %c0_29, %c0_30] : memref<1x1x1024xf32, #tpu.memory_space<vmem>>, vector<1x1x1024xf32>
      %58 = vector.shape_cast %57 : vector<1x1x1024xf32> to vector<1x1024xf32>
      %59 = vector.shape_cast %50 : vector<1x1024xf32> to vector<1x1x1024xf32>
      tpu.vector_store %arg8[%c0_28, %c0_29, %c0_30], %59 {strides = array<i32>} : memref<1x1x1024xf32, #tpu.memory_space<vmem>>, vector<1x1x1024xf32>,
    } else {
    }
    %c0_i32_26 = arith.constant 0 : i32
    %54 = arith.cmpi ne, %arg1, %c0_i32_26 : i32
    %55 = arith.extui %54 : i1 to i32
    %c0_i32_27 = arith.constant 0 : i32
    %56 = arith.cmpi ne, %55, %c0_i32_27 : i32
    scf.if %56 {
      %c0_28 = arith.constant 0 : index
      %c0_29 = arith.constant 0 : index
      %c0_30 = arith.constant 0 : index
      %57 = vector.load %arg8[%c0_28, %c0_29, %c0_30] : memref<1x1x1024xf32, #tpu.memory_space<vmem>>, vector<1x1x1024xf32>
      %58 = vector.shape_cast %57 : vector<1x1x1024xf32> to vector<1x1024xf32>
      %59 = arith.maximumf %58, %50 : vector<1x1024xf32>
      %c0_31 = arith.constant 0 : index
      %c0_32 = arith.constant 0 : index
      %c0_33 = arith.constant 0 : index
      %60 = vector.load %arg8[%c0_31, %c0_32, %c0_33] : memref<1x1x1024xf32, #tpu.memory_space<vmem>>, vector<1x1x1024xf32>
      %61 = vector.shape_cast %60 : vector<1x1x1024xf32> to vector<1x1024xf32>
      %62 = vector.shape_cast %59 : vector<1x1024xf32> to vector<1x1x1024xf32>
      tpu.vector_store %arg8[%c0_31, %c0_32, %c0_33], %62 {strides = array<i32>} : memref<1x1x1024xf32, #tpu.memory_space<vmem>>, vector<1x1x1024xf32>,
    } else {
    }
    return
  }
  func.func @transform_0(%arg0: i32, %arg1: i32) -> (i32, i32, i32) {
    %c0_i32 = arith.constant 0 : i32
    %c0_i32_0 = arith.constant 0 : i32
    return %arg0, %arg1, %c0_i32 : i32, i32, i32
  }
  func.func @transform_1(%arg0: i32, %arg1: i32) -> (i32, i32) {
    %c0_i32 = arith.constant 0 : i32
    %c0_i32_0 = arith.constant 0 : i32
    %c0_i32_1 = arith.constant 0 : i32
    return %c0_i32, %c0_i32_0 : i32, i32
  }
  func.func @transform_2(%arg0: i32, %arg1: i32) -> (i32, i32) {
    %c0_i32 = arith.constant 0 : i32
    %c0_i32_0 = arith.constant 0 : i32
    %c0_i32_1 = arith.constant 0 : i32
    return %c0_i32, %c0_i32_0 : i32, i32
  }
  func.func @transform_3(%arg0: i32, %arg1: i32) -> (i32, i32) {
    %c0_i32 = arith.constant 0 : i32
    %c0_i32_0 = arith.constant 0 : i32
    %c0_i32_1 = arith.constant 0 : i32
    return %c0_i32, %c0_i32_0 : i32, i32
  }
  func.func @transform_4(%arg0: i32, %arg1: i32) -> (i32, i32) {
    %c0_i32 = arith.constant 0 : i32
    %c0_i32_0 = arith.constant 0 : i32
    %c0_i32_1 = arith.constant 0 : i32
    return %c0_i32, %c0_i32_0 : i32, i32
  }
  func.func @transform_5(%arg0: i32, %arg1: i32) -> (i32, i32) {
    %c0_i32 = arith.constant 0 : i32
    %c0_i32_0 = arith.constant 0 : i32
    %c0_i32_1 = arith.constant 0 : i32
    return %c0_i32, %c0_i32_0 : i32, i32
  }
  func.func @transform_6(%arg0: i32, %arg1: i32) -> (i32, i32, i32) {
    %c0_i32 = arith.constant 0 : i32
    %c0_i32_0 = arith.constant 0 : i32
    %c0_i32_1 = arith.constant 0 : i32
    return %arg0, %c0_i32, %c0_i32_0 : i32, i32, i32
  }
}

</mosaic_0001>

<bundles_post_ra>
// kernel: tpu_custom_call.1
= control target key start
LH: loop header
LB: loop body
LE: loop exit
PB: predicated region body
PF: predicated region fallthrough
CT: control target
= control target key end

     0   :  { %s1869_s0 = inlined_call_operand.vmem [shape: f32[2,24,3], index: 0, kind: input, shape index: {}]   ;;  %s1870_s1 = inlined_call_operand.vmem [shape: f32[3,64], index: 1, kind: input, shape index: {}]   ;;  %s1871_s2 = inlined_call_operand.vmem [shape: f32[1,64], index: 2, kind: input, shape index: {}]   ;;  %s1872_s3 = inlined_call_operand.vmem [shape: bf16[64,128], index: 3, kind: input, shape index: {}]   ;;  %s1873_s4 = inlined_call_operand.vmem [shape: f32[1,128], index: 4, kind: input, shape index: {}]   ;;  %s1874_s5 = inlined_call_operand.hbm [shape: bf16[128,1024], index: 5, kind: input, shape index: {}]   ;;  %s1875_s6 = inlined_call_operand.hbm [shape: f32[2,1,1024], index: 6, kind: output, shape index: {}]  }
   0x1   :  { %1881 = sst [smem:[#allocation9_spill]] %s1874_s5 }
   0x2   :  { %11 = vsyncpa [#allocation3], 0 }
   0x3   :  { %12 = vsyncpa [#allocation4], 0 }
   0x4   :  { %14 = vsyncpa [#allocation4 + $0x1], 0  ;;  %s1622_s21 = smov 0   ;;  %s1624_s22 = smov 0  }
   0x5   :  { %s1626_s23 = smov 0   ;;  %s1628_s24 = smov 0  }
   0x6   :  { %s1630_s25 = smov 0   ;;  %s1632_s26 = smov 0  }
   0x7   :  { %s1634_s27 = smov 0   ;;  %s1636_s28 = smov 0  }
   0x8 LB: > { %s1243_s29 = sadd.s32 4294967295, %s1574_s28   ;;  %s1244_s30 = sadd.s32 4294967294, %s1574_s28   ;;  %s1574_s28 = sphi %s1636_s28, %s20_s28   ;;  %s1570_s27 = sphi %s1634_s27, %s1900_s27   ;;  %s1566_s26 = sphi %s1632_s26, %s1899_s26   ;;  %s1562_s25 = sphi %s1630_s25, %s1898_s25   ;;  %s1558_s24 = sphi %s1628_s24, %s1897_s24   ;;  %s1554_s23 = sphi %s1626_s23, %s1896_s23   ;;  %s1550_s22 = sphi %s1624_s22, %s1895_s22   ;;  %s1546_s21 = sphi %s1622_s21, %s1894_s21  }
   0x9   : > { %s29_s7 = sadd.s32 1, %s1566_s26  ;;  %s32_s8 = sadd.s32 1, %s1570_s27 }
   0xa   : > { %p30_p0 = scmp.ge.s32.totalorder %s29_s7, 3  ;;  %s172_s9 = sadd.s32 1, %s1554_s23 }
   0xb   : > { %p182_p1 = scmp.ne.s32.totalorder %s1554_s23, %s1550_s22  ;;  %p183_p2 = scmp.eq.s32.totalorder %s1243_s29, 5 }
   0xc   : > { %s1902_s7 = smov (%p30_p0, %s29_s7), 0  ;;  %s1904_s8 = smov (!%p30_p0, %s32_s8), %s1570_s27 }
   0xd   : > { %p1672_p3 = por %p183_p2, %p182_p1  ;;  %p188_p4 = scmp.ne.s32.totalorder %s1550_s22, %s1546_s21 }
   0xe   : > { %p34_p5 = scmp.ge.s32.totalorder %s1904_s8, 2  ;;  %p189_p6 = scmp.eq.s32.totalorder %s1244_s30, 5 }
   0xf   : > { %s1882_s10 = scalar_select %p1672_p3, 1, 0 }
  0x10   : > { %p1245_p7 = scmp.ge.s32.totalorder %s1574_s28, 1  ;;  %p196_p8 = scmp.lt.s32.totalorder %s1574_s28, 7 }
  0x11   : > { %s1906_s8 = smov (%p34_p5, %s1904_s8), 0  ;;  %p1682_p9 = por %p189_p6, %p188_p4 }
  0x12   : > { %1883 = sst [smem:[#allocation8_spill]] %s1906_s8  ;;  %p1686_p10 = pnand %p1245_p7, %p196_p8 }
  0x13   : > { %s1884_s11 = scalar_select %p1682_p9, 1, 0 }
  0x14   : > { %s1885_s12 = scalar_select %p1686_p10, 1, 0 }
  0x15   : > { %s169_s13 = ssub.s32 %s1570_s27, %s1906_s8  ;;  %p1355_p12 = pneg %p1686_p10 }
  0x16   : > { %p170_p11 = scmp.eq.s32.totalorder %s169_s13, 0  ;;  %p1694_p13 = scmp.eq.s32.totalorder %s1243_s29, 0 }
  0x17   : > { %s1576_s16 = smov [#allocation2]   ;;  %s1888_s5 = sld [smem:[#allocation9_spill]] }
  0x18   : > { %s1886_s14 = scalar_select %p1694_p13, 1, 0 }
  0x19   : > { %s1699_s15 = scalar_select %p170_p11, %s1554_s23, %s172_s9  }
  0x1a   : > { %s220_s17 = sshll.u32 %s1576_s16, 4  ;;  %p1703_p0 = pnand %p1694_p13, %p1355_p12  ;;  %s221_s17 = int_to_ptr.vmem [resolvable:$true] %s220_s17 }
  0x1c   : > { %p1450_p2 = pneg %p1703_p0 }
  0x1d   : > { %s1448_s30 = scalar_lea.hbm %s1888_s5, 8192 }
  0x1e   : > { %p1449_p1 = scmp.ne.s32.totalorder %s1888_s5, %s1448_s30  ;;  %p1455_p6 = scmp.lt.u32.totalorder %s1448_s30, %s1888_s5 }
  0x20   : > { %p1451_p4 = pnand %p1450_p2, %p1449_p1 }
  0x22   : > { %p1452_p5 = pneg %p1451_p4 }
  0x24   : > { %p1457_p7 = pnand %p1455_p6, %p1452_p5 }
  0x26   : > { %1460 = shalt.err (!%p1457_p7)
}
  0x27   : > { %s1461_s8 = scalar_lea.vmem %s221_s17, 8192  ;;  %p1469_p9 = scmp.lt.s32.totalorder %s221_s17, %s221_s17 }
  0x28   : > { %p1462_p8 = scmp.ne.s32.totalorder %s221_s17, %s1461_s8  ;;  %p1470_p3 = scmp.lt.s32.totalorder %s1461_s8, %s1461_s8 }
  0x2a   : > { %p1464_p11 = pnand %p1462_p8, %p1450_p2  ;;  %p1471_p13 = por %p1470_p3, %p1469_p9 }
  0x2c   : > { %p1465_p12 = pneg %p1464_p11 }
  0x2e   : > { %p1472_p10 = pnand %p1471_p13, %p1465_p12 }
  0x30   : > { %1475 = shalt.err (!%p1472_p10)
}
  0x31   : > { %s1577_s19 = smov 512   ;;  %s1578_s20 = smov 32  }
  0x32   : > { %1358 = dma.hbm_to_vmem [thread:$0]  (!%p1703_p0), %s1888_s5, 8192, %s221_s17, [#allocation3], %s1577_s19, %s1577_s19, %s1578_s20  }
  0x33   : > { %p1889_p1 = scmp.ne.s32.totalorder %s1885_s12, 0 }
  0x34   : > { %p1890_p4 = scmp.ne.s32.totalorder (!%p1889_p1), %s1886_s14, 0 }
  0x35   : > { %247 = sbr.rel (%p1889_p1) target bundleno = 744 (0x2e8), region = 44 }
  0x3c   : > { %1537 = dma.done.wait (%p1890_p4), [#allocation3], 8192  }
  0x3d   : > { %1539 = vsyncadd (%p1890_p4), [#allocation3], 4294959104  ;;  %p280_p3 = scmp.lt.s32.totalorder %s1562_s25, 1  ;;  %p282_p9 = scmp.lt.s32.totalorder %s1558_s24, 2  ;;  %v1579_v0 = vmov 0   ;;  %v1580_v1 = vmov 2   ;;  %v296_v41 = vlaneseq }
  0x3e   : > { %1440 = vset.pattern.permute.xlu0 %v1579_v0  ;;  %s277_s8 = sand.u32 1, %s1550_s22   ;;  %544 = vmatprep.mubr.bf16.mxu1 %v1579_v0  ;;  %v1581_v2 = vmov 0.0   ;;  %v1444_v3 = vld [vmem:[%s1872_s3] sm:$0xff]   ;;  %v1445_v5 = vld [vmem:[%s1872_s3 + $0x8] sm:$0xff]   ;;  %v1582_v6 = vmov 1   ;;  %v1446_v7 = vld [vmem:[%s1872_s3 + $0x10] sm:$0xff]  }
  0x3f   : > { %s281_s12 = scalar_select %p280_p3, %s1562_s25, 1  ;;  %1442 = vset.pattern.permute.xlu1 %v1580_v1  ;;  %1336 = vmatprep.subr.bf16.mxu0 %v1581_v2  ;;  %v1447_v8 = vld [vmem:[%s1872_s3 + $0x18] sm:$0xff]   ;;  %vm1583_vm0 = vmmov 0   ;;  %v416_v9 = vld [vmem:[#allocation2] sm:$0xff]  ;;  %v1755_v11 = vld [vmem:[#allocation2 + $0x8] sm:$0xff]  ;;  %v1763_v42 = vshrl.u32 %v296_v41, 7 }
  0x40   : > { %s283_s14 = scalar_select %p282_p9, %s1558_s24, 2  ;;  %1337 = vmatpush3.bf16.msra.mxu0 %v1444_v3  ;;  %1344 = vmatprep.mubr.msk.bf16.mxu0 %vm1583_vm0, %v1581_v2  ;;  %v417_v10 = vld [vmem:[#allocation2 + $0x20] sm:$0xff]  ;;  %v1757_v13 = vld [vmem:[#allocation2 + $0x28] sm:$0xff]  ;;  %vm370_vm1 = vcmask 523264  }
  0x41   : > { %s1348_s17 = smul.u32 3, %s281_s12  ;;  %s1738_s18 = sshll.u32 %s277_s8, 3  ;;  %1338 = vmatprep.subr.bf16.mxu0 %v1581_v2  ;;  %v1260_v12 = vcombine.high %v416_v9, %v417_v10  ;;  %v1259_v14 = vcombine.low %v416_v9, %v417_v10  ;;  %v418_v15 = vld [vmem:[#allocation2 + $0x40] sm:$0xff]  ;;  %v1275_v17 = vcombine.low %v1755_v11, %v1757_v13  ;;  %v1276_v18 = vcombine.high %v1755_v11, %v1757_v13  ;;  %v567_v60 = vld [vmem:[#allocation2 + $0x48] sm:$0xff] }
  0x42   : > { %v419_v16 = vld [vmem:[#allocation2 + $0x60] sm:$0xff]  ;;  %v298_v43 = vsub.s32 0, %v1763_v42  ;;  %v315_v46 = vsub.s32 1, %v1763_v42  ;;  %v325_v47 = vsub.s32 2, %v1763_v42  ;;  %v568_v61 = vld [vmem:[#allocation2 + $0x68] sm:$0xff]  ;;  %s1798_s12 = scalar_lea.vmem [#allocation5], %s1738_s18 }
  0x43   : > { %s285_s30 = sadd.s32 %s1348_s17, %s283_s14  ;;  %v1262_v19 = vcombine.high %v418_v15, %v419_v16  ;;  %512 = vmatprep.subr.bf16.mxu1 %v1260_v12  ;;  %v1261_v20 = vcombine.low %v418_v15, %v419_v16  ;;  %v420_v21 = vld [vmem:[#allocation2 + $0x80] sm:$0xff]  ;;  %v570_v3 = vld [vmem:[#allocation2 + $0xa8] sm:$0xff]  ;;  %p1323_p10 = scmp.ne.s32.totalorder %s1558_s24, 0 }
  0x44   : > { %s1251_s9 = sshll.u32 %s285_s30, 3  ;;  %1339 = vmatpush3.bf16.msra.mxu0 %v1445_v5  ;;  %513 = vmatpush1.bf16.msra.mxu1 %v1259_v14  ;;  %v421_v22 = vld [vmem:[#allocation2 + $0xa0] sm:$0xff]  ;;  %v573_v10 = vld [vmem:[#allocation2 + $0x108] sm:$0xff] }
  0x45   : > { %s287_s20 = scalar_lea.vmem %s1869_s0, %s1251_s9  ;;  %1340 = vmatprep.subr.bf16.mxu0 %v1581_v2  ;;  %514 = vmatprep.subr.bf16.mxu1 %v1262_v19  ;;  %v1264_v23 = vcombine.high %v420_v21, %v421_v22  ;;  %v1263_v24 = vcombine.low %v420_v21, %v421_v22  ;;  %v422_v25 = vld [vmem:[#allocation2 + $0xc0] sm:$0xff]  ;;  %v574_v12 = vld [vmem:[#allocation2 + $0x128] sm:$0xff] }
  0x46   : > { %v289_v4 = vld [vmem:[%s287_s20] sm:$0xff]  ;;  %v1284_v15 = vcombine.high %v573_v10, %v574_v12  ;;  %v575_v16 = vld [vmem:[#allocation2 + $0x148] sm:$0xff]  ;;  %v1283_v13 = vcombine.low %v573_v10, %v574_v12  ;;  %v872_v10 = vld [vmem:[#allocation2 + $0x138] sm:$0xff] }
  0x47   : > { %293 = vperm.xlu0 %1440, %v289_v4   ;;  %320 = vperm.xlu1 %1442, %v289_v4   ;;  %v423_v26 = vld [vmem:[#allocation2 + $0xe0] sm:$0xff]  ;;  %v576_v11 = vld [vmem:[#allocation2 + $0x168] sm:$0xff] }
  0x48   : > { %1341 = vmatpush3.bf16.msra.mxu0 %v1446_v7  ;;  %515 = vmatpush1.bf16.msra.mxu1 %v1261_v20  ;;  %v1266_v27 = vcombine.high %v422_v25, %v423_v26  ;;  %v1265_v28 = vcombine.low %v422_v25, %v423_v26  ;;  %v424_v29 = vld [vmem:[#allocation2 + $0x100] sm:$0xff]  ;;  %v572_v7 = vld [vmem:[#allocation2 + $0xe8] sm:$0xff]  ;;  %v1285_v20 = vcombine.low %v575_v16, %v576_v11 }
  0x49   : > { %1342 = vmatprep.subr.bf16.mxu0 %v1581_v2  ;;  %516 = vmatprep.subr.bf16.mxu1 %v1264_v23  ;;  %v425_v30 = vld [vmem:[#allocation2 + $0x120] sm:$0xff]  ;;  %v569_v2 = vld [vmem:[#allocation2 + $0x88] sm:$0xff] }
  0x4a   : > { %v1268_v31 = vcombine.high %v424_v29, %v425_v30  ;;  %v1267_v32 = vcombine.low %v424_v29, %v425_v30  ;;  %v426_v33 = vld [vmem:[#allocation2 + $0x140] sm:$0xff]  ;;  %v1280_v5 = vcombine.high %v569_v2, %v570_v3  ;;  %v578_v19 = vld [vmem:[#allocation2 + $0x1a8] sm:$0xff] }
  0x4b   : > { %1441 = vset.pattern.permute.xlu0 %v1582_v6  ;;  %v427_v34 = vld [vmem:[#allocation2 + $0x160] sm:$0xff]  ;;  %v571_v6 = vld [vmem:[#allocation2 + $0xc8] sm:$0xff] }
  0x4c   : > { %310 = vperm.xlu0 %1441, %v289_v4   ;;  %1343 = vmatpush3.bf16.msra.mxu0 %v1447_v8  ;;  %v1270_v35 = vcombine.high %v426_v33, %v427_v34  ;;  %v1269_v36 = vcombine.low %v426_v33, %v427_v34  ;;  %v428_v37 = vld [vmem:[#allocation2 + $0x180] sm:$0xff]  ;;  %v1277_v4 = vcombine.low %v567_v60, %v568_v61  ;;  %v579_v25 = vld [vmem:[#allocation2 + $0x1c8] sm:$0xff]  ;;  %v863_v33 = vld [vmem:[#allocation2 + $0x18] sm:$0xff] }
  0x4d   : > { %661 = vmatprep.subr.bf16.mxu0 %v1276_v18  ;;  %517 = vmatpush1.bf16.msra.mxu1 %v1263_v24  ;;  %v429_v38 = vld [vmem:[#allocation2 + $0x1a0] sm:$0xff]  ;;  %v1279_v8 = vcombine.low %v569_v2, %v570_v3  ;;  %v1282_v9 = vcombine.high %v571_v6, %v572_v7  ;;  %v1281_v14 = vcombine.low %v571_v6, %v572_v7  ;;  %v577_v18 = vld [vmem:[#allocation2 + $0x188] sm:$0xff]  ;;  %v870_v2 = vld [vmem:[#allocation2 + $0xf8] sm:$0xff] }
  0x4e   : > { %518 = vmatprep.subr.bf16.mxu1 %v1266_v27  ;;  %v1272_v39 = vcombine.high %v428_v37, %v429_v38  ;;  %v1271_v40 = vcombine.low %v428_v37, %v429_v38  ;;  %v290_v44 = vld [vmem:[%s1870_s1] sm:$0x7]  ;;  %v1288_v21 = vcombine.high %v577_v18, %v578_v19  ;;  %v1287_v22 = vcombine.low %v577_v18, %v578_v19  ;;  %v580_v27 = vld [vmem:[#allocation2 + $0x1e8] sm:$0xff]  ;;  %v722_v7 = vld [vmem:[#allocation2 + $0x110] sm:$0xff] }
  0x4f   : > { %v299_v45 = vrot.slane %v290_v44, %v298_v43  ;;  %v316_v50 = vrot.slane %v290_v44, %v315_v46  ;;  %v326_v51 = vrot.slane %v290_v44, %v325_v47  ;;  %v1252_v52 = vld [vmem:[%s1871_s2] ss:$0 sm:$0xff]  ;;  %v1290_v29 = vcombine.high %v579_v25, %v580_v27  ;;  %v716_v44 = vld [vmem:[#allocation2 + $0x50] sm:$0xff]  ;;  %v865_v47 = vld [vmem:[#allocation2 + $0x58] sm:$0xff] }
  0x50   : > { %1443 = vset.pattern.permute.xlu0 %v1580_v1  ;;  %v1278_v1 = vcombine.high %v567_v60, %v568_v61  ;;  %v430_v23 = vld [vmem:[#allocation2 + $0x1c0] sm:$0xff]  ;;  %v717_v46 = vld [vmem:[#allocation2 + $0x70] sm:$0xff] }
  0x51   : > { %519 = vmatpush1.bf16.msra.mxu1 %v1265_v28  ;;  %v431_v24 = vld [vmem:[#allocation2 + $0x1e0] sm:$0xff]  ;;  %v1289_v28 = vcombine.low %v579_v25, %v580_v27  ;;  %v876_v25 = vld [vmem:[#allocation2 + $0x1b8] sm:$0xff] }
  0x52   : > { %520 = vmatprep.subr.bf16.mxu1 %v1268_v31  ;;  %v1274_v26 = vcombine.high %v430_v23, %v431_v24  ;;  %v1273_v30 = vcombine.low %v430_v23, %v431_v24  ;;  %v714_v31 = vld [vmem:[#allocation2 + $0x10] sm:$0xff]  ;;  %v875_v24 = vld [vmem:[#allocation2 + $0x198] sm:$0xff] }
  0x53   : > { %v727_v23 = vld [vmem:[#allocation2 + $0x1b0] sm:$0xff] }
  0x55   : > { %521 = vmatpush1.bf16.msra.mxu1 %v1267_v32  ;;  %v715_v32 = vld [vmem:[#allocation2 + $0x30] sm:$0xff] }
  0x56   : > { %522 = vmatprep.subr.bf16.mxu1 %v1270_v35  ;;  %v1292_v34 = vcombine.high %v714_v31, %v715_v32  ;;  %v864_v35 = vld [vmem:[#allocation2 + $0x38] sm:$0xff] }
  0x57   : > { %v1307_v37 = vcombine.low %v863_v33, %v864_v35  ;;  %v1308_v38 = vcombine.high %v863_v33, %v864_v35  ;;  %v878_v33 = vld [vmem:[#allocation2 + $0x1f8] sm:$0xff]  ;;  %v1319_v35 = vcombine.low %v875_v24, %v876_v25 }
  0x59   : > { %523 = vmatpush1.bf16.msra.mxu1 %v1269_v36  ;;  %v1291_v36 = vcombine.low %v714_v31, %v715_v32  ;;  %v729_v31 = vld [vmem:[#allocation2 + $0x1f0] sm:$0xff]  ;;  %v877_v32 = vld [vmem:[#allocation2 + $0x1d8] sm:$0xff] }
  0x5a   : > { %524 = vmatprep.subr.bf16.mxu1 %v1272_v39  ;;  %v1253_v39 = vld [vmem:[%s1873_s4] ss:$0 sm:$0xff] }
  0x5d   : > { %525 = vmatpush1.bf16.msra.mxu1 %v1271_v40 }
  0x5e   : > { %526 = vmatprep.subr.bf16.mxu1 %v1274_v26 }
  0x61   : > { %527 = vmatpush1.bf16.msra.mxu1 %v1273_v30  ;;  %v728_v30 = vld [vmem:[#allocation2 + $0x1d0] sm:$0xff] }
  0x62   : > { %810 = vmatprep.subr.bf16.mxu1 %v1292_v34 }
  0xc6   : > { %v294_v48 = vpop.permute.xlu0 %293  ;;  %v321_v53 = vpop.permute.xlu1 %320 }
  0xc7   : > { %v300_v49 = vmul.f32 %v299_v45, %v294_v48  ;;  %v327_v57 = vmul.f32 %v326_v51, %v321_v53  ;;  %v866_v48 = vld [vmem:[#allocation2 + $0x78] sm:$0xff] }
  0xc8   : > { %v1310_v53 = vcombine.high %v865_v47, %v866_v48 }
  0xc9   : > { %v308_v55 = vadd.f32 %v1252_v52, %v300_v49  ;;  %v1294_v52 = vcombine.high %v716_v44, %v717_v46 }
  0xcb   : > { %v311_v54 = vpop.permute.xlu0 %310 }
  0xcc   : > { %v317_v56 = vmul.f32 %v316_v50, %v311_v54  ;;  %v718_v54 = vld [vmem:[#allocation2 + $0x90] sm:$0xff] }
  0xce   : > { %v318_v58 = vadd.f32 %v317_v56, %v308_v55  ;;  %v719_v55 = vld [vmem:[#allocation2 + $0xb0] sm:$0xff]  ;;  %v867_v56 = vld [vmem:[#allocation2 + $0x98] sm:$0xff] }
  0xcf   : > { %v1296_v60 = vcombine.high %v718_v54, %v719_v55  ;;  %v1295_v3 = vcombine.low %v718_v54, %v719_v55 }
  0xd0   : > { %v328_v59 = vadd.f32 %v327_v57, %v318_v58  ;;  %v868_v57 = vld [vmem:[#allocation2 + $0xb8] sm:$0xff]  ;;  %v1293_v58 = vcombine.low %v716_v44, %v717_v46 }
  0xd1   : > { %v1312_v61 = vcombine.high %v867_v56, %v868_v57 }
  0xd2   : > { %v329_v62 = vmax.f32 %v328_v59, 0.0  ;;  %v1309_v59 = vcombine.low %v865_v47, %v866_v48 }
  0xd4   : > { %v330_v63 = vpack.c.bf16 %v329_v62, %v329_v62  ;;  %v720_v62 = vld [vmem:[#allocation2 + $0xd0] sm:$0xff] }
  0xd6   : > { %1345 = vmatmul.mubr.msk.bf16.vlgmr.msra.gmra.mrb[0].mxu0 %vm370_vm1, %v330_v63  ;;  %v721_v63 = vld [vmem:[#allocation2 + $0xf0] sm:$0xff] }
  0xd7   : > { %662 = vmatpush1.bf16.msra.mxu0 %v1275_v17  ;;  %693 = vmatprep.mubr.bf16.mxu0 %v1579_v0  ;;  %v1286_v17 = vcombine.high %v575_v16, %v576_v11  ;;  %v1297_v12 = vcombine.low %v720_v62, %v721_v63  ;;  %v724_v16 = vld [vmem:[#allocation2 + $0x150] sm:$0xff] }
  0xd8   : > { %663 = vmatprep.subr.bf16.mxu0 %v1278_v1  ;;  %v869_v1 = vld [vmem:[#allocation2 + $0xd8] sm:$0xff]  ;;  %v725_v11 = vld [vmem:[#allocation2 + $0x170] sm:$0xff] }
  0xd9   : > { %v1314_v6 = vcombine.high %v869_v1, %v870_v2  ;;  %v1301_v26 = vcombine.low %v724_v16, %v725_v11 }
  0xdb   : > { %664 = vmatpush1.bf16.msra.mxu0 %v1277_v4  ;;  %v1311_v4 = vcombine.low %v867_v56, %v868_v57 }
  0xdc   : > { %665 = vmatprep.subr.bf16.mxu0 %v1280_v5  ;;  %v1298_v5 = vcombine.high %v720_v62, %v721_v63 }
  0xdf   : > { %666 = vmatpush1.bf16.msra.mxu0 %v1279_v8  ;;  %v723_v8 = vld [vmem:[#allocation2 + $0x130] sm:$0xff] }
  0xe0   : > { %667 = vmatprep.subr.bf16.mxu0 %v1282_v9  ;;  %v871_v9 = vld [vmem:[#allocation2 + $0x118] sm:$0xff]  ;;  %v1299_v18 = vcombine.low %v722_v7, %v723_v8 }
  0xe1   : > { %v1315_v19 = vcombine.low %v871_v9, %v872_v10 }
  0xe3   : > { %668 = vmatpush1.bf16.msra.mxu0 %v1281_v14  ;;  %v1313_v14 = vcombine.low %v869_v1, %v870_v2 }
  0xe4   : > { %669 = vmatprep.subr.bf16.mxu0 %v1284_v15  ;;  %v1300_v15 = vcombine.high %v722_v7, %v723_v8 }
  0xe7   : > { %670 = vmatpush1.bf16.msra.mxu0 %v1283_v13  ;;  %v873_v13 = vld [vmem:[#allocation2 + $0x158] sm:$0xff] }
  0xe8   : > { %671 = vmatprep.subr.bf16.mxu0 %v1286_v17  ;;  %v874_v17 = vld [vmem:[#allocation2 + $0x178] sm:$0xff] }
  0xe9   : > { %v1317_v27 = vcombine.low %v873_v13, %v874_v17 }
  0xeb   : > { %672 = vmatpush1.bf16.msra.mxu0 %v1285_v20  ;;  %v1302_v20 = vcombine.high %v724_v16, %v725_v11 }
  0xec   : > { %673 = vmatprep.subr.bf16.mxu0 %v1288_v21  ;;  %v1318_v21 = vcombine.high %v873_v13, %v874_v17 }
  0xef   : > { %674 = vmatpush1.bf16.msra.mxu0 %v1287_v22  ;;  %v726_v22 = vld [vmem:[#allocation2 + $0x190] sm:$0xff] }
  0xf0   : > { %675 = vmatprep.subr.bf16.mxu0 %v1290_v29  ;;  %v1320_v29 = vcombine.high %v875_v24, %v876_v25  ;;  %v1303_v34 = vcombine.low %v726_v22, %v727_v23 }
  0xf3   : > { %676 = vmatpush1.bf16.msra.mxu0 %v1289_v28  ;;  %v1304_v28 = vcombine.high %v726_v22, %v727_v23 }
  0xf4   : > { %959 = vmatprep.subr.bf16.mxu0 %v1308_v38  ;;  %v1305_v38 = vcombine.low %v728_v30, %v729_v31 }
 0x1a9   : > { %v408_v40 = vpop.f32.mrb[0].mxu0 }
 0x1aa   : > { %v409_v41 = vadd.f32 %v1253_v39, %v408_v40  ;;  %v1346_v43 = vpop.f32.mrb[1].mxu0  ;;  %v1321_v39 = vcombine.low %v877_v32, %v878_v33 }
 0x1ab   : > { %v411_v45 = vpop.f32.mrb[2].mxu0 }
 0x1ac   : > { %v414_v49 = vmax.f32 %v409_v41, 0.0  ;;  %v1347_v50 = vpop.f32.mrb[3].mxu0 }
 0x1ae   : > { %v1781_v51 = vpack.c.bf16 %v414_v49, %v414_v49 }
 0x1b0   : > { %545 = vmatmul.mubr.bf16.vlgmr.msra.gmra.mrb[0].mxu1 %v1781_v51  ;;  %694 = vmatmul.mubr.bf16.vlgmr.msra.gmra.mrb[4].mxu0 %v1781_v51 }
 0x1b1   : > { %811 = vmatpush1.bf16.msra.mxu1 %v1291_v36  ;;  %960 = vmatpush1.bf16.msra.mxu0 %v1307_v37  ;;  %v1306_v36 = vcombine.high %v728_v30, %v729_v31  ;;  %v1322_v37 = vcombine.high %v877_v32, %v878_v33 }
 0x1b2   : > { %812 = vmatprep.subr.bf16.mxu1 %v1294_v52  ;;  %961 = vmatprep.subr.bf16.mxu0 %v1310_v53 }
 0x1b3   : > { %842 = vmatprep.mubr.bf16.mxu1 %v1579_v0  ;;  %991 = vmatprep.mubr.bf16.mxu0 %v1579_v0  ;;  %v1316_v0 = vcombine.high %v871_v9, %v872_v10 }
 0x1b5   : > { %813 = vmatpush1.bf16.msra.mxu1 %v1293_v58  ;;  %962 = vmatpush1.bf16.msra.mxu0 %v1309_v59 }
 0x1b6   : > { %814 = vmatprep.subr.bf16.mxu1 %v1296_v60  ;;  %963 = vmatprep.subr.bf16.mxu0 %v1312_v61 }
 0x1b9   : > { %815 = vmatpush1.bf16.msra.mxu1 %v1295_v3  ;;  %964 = vmatpush1.bf16.msra.mxu0 %v1311_v4 }
 0x1ba   : > { %816 = vmatprep.subr.bf16.mxu1 %v1298_v5  ;;  %965 = vmatprep.subr.bf16.mxu0 %v1314_v6 }
 0x1bd   : > { %817 = vmatpush1.bf16.msra.mxu1 %v1297_v12  ;;  %966 = vmatpush1.bf16.msra.mxu0 %v1313_v14 }
 0x1be   : > { %818 = vmatprep.subr.bf16.mxu1 %v1300_v15  ;;  %967 = vmatprep.subr.bf16.mxu0 %v1316_v0 }
 0x1c1   : > { %819 = vmatpush1.bf16.msra.mxu1 %v1299_v18  ;;  %968 = vmatpush1.bf16.msra.mxu0 %v1315_v19 }
 0x1c2   : > { %820 = vmatprep.subr.bf16.mxu1 %v1302_v20  ;;  %969 = vmatprep.subr.bf16.mxu0 %v1318_v21 }
 0x1c5   : > { %821 = vmatpush1.bf16.msra.mxu1 %v1301_v26  ;;  %970 = vmatpush1.bf16.msra.mxu0 %v1317_v27 }
 0x1c6   : > { %822 = vmatprep.subr.bf16.mxu1 %v1304_v28  ;;  %971 = vmatprep.subr.bf16.mxu0 %v1320_v29 }
 0x1c9   : > { %823 = vmatpush1.bf16.msra.mxu1 %v1303_v34  ;;  %972 = vmatpush1.bf16.msra.mxu0 %v1319_v35 }
 0x1ca   : > { %824 = vmatprep.subr.bf16.mxu1 %v1306_v36  ;;  %973 = vmatprep.subr.bf16.mxu0 %v1322_v37 }
 0x1cd   : > { %825 = vmatpush1.bf16.msra.mxu1 %v1305_v38  ;;  %974 = vmatpush1.bf16.msra.mxu0 %v1321_v39 }
 0x1d0   : > { %843 = vmatmul.mubr.bf16.vlgmr.msra.gmra.mrb[4].mxu1 %v1781_v51  ;;  %992 = vmatmul.mubr.bf16.vlgmr.msra.gmra.mrb[8].mxu0 %v1781_v51 }
 0x283   : > { %v546_v40 = vpop.f32.mrb[0].mxu1  ;;  %v695_v41 = vpop.f32.mrb[4].mxu0 }
 0x284   : > { %v553_v43 = vrot.slane %v546_v40, 4  ;;  %v702_v44 = vrot.slane %v695_v41, 4  ;;  %v548_v45 = vpop.f32.mrb[1].mxu1  ;;  %v697_v46 = vpop.f32.mrb[5].mxu0 }
 0x285   : > { %v559_v47 = vrot.slane %v548_v45, 4  ;;  %v708_v48 = vrot.slane %v697_v46, 4  ;;  %v550_v49 = vpop.f32.mrb[2].mxu1  ;;  %v699_v50 = vpop.f32.mrb[6].mxu0 }
 0x286   : > { %v554_v52 = vmax.f32 %v546_v40, %v553_v43  ;;  %v703_v53 = vmax.f32 %v695_v41, %v702_v44  ;;  %v551_v54 = vpop.f32.mrb[3].mxu1  ;;  %v700_v55 = vpop.f32.mrb[7].mxu0  ;;  %v1584_v41 = vmov (!%p1323_p10), 1966171168  }
 0x287   : > { %v560_v56 = vmax.f32 %v548_v45, %v559_v47  ;;  %v709_v57 = vmax.f32 %v697_v46, %v708_v48  ;;  %v1029_v43 = vunpack.c.l.s4 (!%p1323_p10), %v1584_v41 }
 0x288   : > { %v555_v58 = vrot.slane %v554_v52, 2  ;;  %v704_v59 = vrot.slane %v703_v53, 2 }
 0x289   : > { %v561_v60 = vrot.slane %v560_v56, 2  ;;  %v710_v51 = vrot.slane %v709_v57, 2  ;;  %v1030_v48 = vunpack.c.0.s8 (!%p1323_p10), %v1029_v43 }
 0x28a   : > { %v556_v61 = vmax.f32 %v554_v52, %v555_v58  ;;  %v705_v62 = vmax.f32 %v703_v53, %v704_v59 }
 0x28b   : > { %v562_v63 = vmax.f32 %v560_v56, %v561_v60  ;;  %v711_v1 = vmax.f32 %v709_v57, %v710_v51  ;;  %v1033_v49 = vsub.s32 (!%p1323_p10), %v1030_v48, %v1763_v42 }
 0x28c   : > { %v557_v2 = vrot.slane %v556_v61, 1  ;;  %v706_v3 = vrot.slane %v705_v62, 1 }
 0x28d   : > { %v563_v4 = vrot.slane %v562_v63, 1  ;;  %v712_v5 = vrot.slane %v711_v1, 1 }
 0x28e   : > { %v1789_v6 = vmax.f32 %v556_v61, %v557_v2  ;;  %v1791_v7 = vmax.f32 %v705_v62, %v706_v3 }
 0x28f   : > { %v1793_v8 = vmax.f32 %v562_v63, %v563_v4  ;;  %v1795_v9 = vmax.f32 %v711_v1, %v712_v5 }
 0x291   : > { %v1024_v44 = vcombine.low (!%p1323_p10), %v1789_v6, %v1793_v8  ;;  %v1025_v45 = vcombine.low (!%p1323_p10), %v1791_v7, %v1795_v9 }
 0x293   : > { %v1034_v50 = vrot.slane (!%p1323_p10), %v1024_v44, %v1033_v49  ;;  %v1041_v52 = vrot.slane (!%p1323_p10), %v1025_v45, %v1033_v49 }
 0x295   : > { %v1056_v55 = vcombine.low (!%p1323_p10), %v1034_v50, %v1041_v52 }
 0x297   : > { %v1064_v57 = vrot.slane (!%p1323_p10), %v1056_v55, %v1033_v49 }
 0x2a3   : > { %v844_v10 = vpop.f32.mrb[4].mxu1  ;;  %v993_v12 = vpop.f32.mrb[8].mxu0 }
 0x2a4   : > { %v851_v14 = vrot.slane %v844_v10, 4  ;;  %v1000_v15 = vrot.slane %v993_v12, 4  ;;  %v846_v0 = vpop.f32.mrb[5].mxu1  ;;  %v995_v16 = vpop.f32.mrb[9].mxu0 }
 0x2a5   : > { %v857_v11 = vrot.slane %v846_v0, 4  ;;  %v1006_v13 = vrot.slane %v995_v16, 4  ;;  %v848_v17 = vpop.f32.mrb[6].mxu1  ;;  %v997_v18 = vpop.f32.mrb[10].mxu0 }
 0x2a6   : > { %v852_v19 = vmax.f32 %v844_v10, %v851_v14  ;;  %v1001_v20 = vmax.f32 %v993_v12, %v1000_v15  ;;  %v849_v21 = vpop.f32.mrb[7].mxu1  ;;  %v998_v22 = vpop.f32.mrb[11].mxu0 }
 0x2a7   : > { %v858_v23 = vmax.f32 %v846_v0, %v857_v11  ;;  %v1007_v24 = vmax.f32 %v995_v16, %v1006_v13 }
 0x2a8   : > { %v853_v25 = vrot.slane %v852_v19, 2  ;;  %v1002_v26 = vrot.slane %v1001_v20, 2 }
 0x2a9   : > { %v859_v27 = vrot.slane %v858_v23, 2  ;;  %v1008_v28 = vrot.slane %v1007_v24, 2  ;;  %1015 = sbr.rel (%p1323_p10) target bundleno = 700 (0x2bc), region = 52 }
 0x2aa   : > { %v854_v29 = vmax.f32 %v852_v19, %v853_v25  ;;  %v1003_v30 = vmax.f32 %v1001_v20, %v1002_v26 }
 0x2ab   : > { %v860_v31 = vmax.f32 %v858_v23, %v859_v27  ;;  %v1009_v32 = vmax.f32 %v1007_v24, %v1008_v28 }
 0x2ac   : > { %v855_v33 = vrot.slane %v854_v29, 1  ;;  %v1004_v34 = vrot.slane %v1003_v30, 1 }
 0x2ad   : > { %v861_v35 = vrot.slane %v860_v31, 1  ;;  %v1010_v36 = vrot.slane %v1009_v32, 1 }
 0x2ae   : > { %v856_v37 = vmax.f32 %v854_v29, %v855_v33  ;;  %v1005_v38 = vmax.f32 %v1003_v30, %v1004_v34 }
 0x2af   : > { %v862_v39 = vmax.f32 %v860_v31, %v861_v35  ;;  %v1011_v40 = vmax.f32 %v1009_v32, %v1010_v36 }
 0x2b1   : > { %v1026_v46 = vcombine.low %v856_v37, %v862_v39  ;;  %v1027_v47 = vcombine.low %v1005_v38, %v1011_v40 }
 0x2b3   : > { %v1048_v53 = vrot.slane %v1026_v46, %v1033_v49  ;;  %v1055_v54 = vrot.slane %v1027_v47, %v1033_v49 }
 0x2b5   : > { %v1057_v56 = vcombine.low %v1048_v53, %v1055_v54 }
 0x2b7   : > { %v1071_v58 = vrot.slane %v1057_v56, %v1033_v49 }
 0x2b9   : > { %v1072_v59 = vcombine.low %v1064_v57, %v1071_v58 }
 0x2bb   : > { %1074 = vst [vmem:[%s1798_s12] sm:$0xff] %v1072_v59 }
 0x2bc PF: > { %p1324_p13 = scmp.eq.s32.totalorder %s1558_s24, 0 }
 0x2bd   : > { %v1585_v60 = vmov (!%p1324_p13), 1966171168   ;;  %v1088_v61 = vcombine.low (!%p1324_p13), %v1789_v6, %v1793_v8  ;;  %v1089_v62 = vcombine.low (!%p1324_p13), %v1791_v7, %v1795_v9  ;;  %v1090_v63 = vcombine.low (!%p1324_p13), %v856_v37, %v862_v39 }
 0x2be   : > { %1078 = sbr.rel (%p1324_p13) target bundleno = 719 (0x2cf), region = 56  ;;  %v1093_v51 = vunpack.c.l.s4 (!%p1324_p13), %v1585_v60  ;;  %v1091_v1 = vcombine.low (!%p1324_p13), %v1005_v38, %v1011_v40 }
 0x2c0   : > { %v1094_v2 = vunpack.c.0.s8 (!%p1324_p13), %v1093_v51 }
 0x2c2   : > { %v1097_v3 = vsub.s32 (!%p1324_p13), %v1094_v2, %v1763_v42  ;;  %v1079_v11 = vld [vmem:[%s1798_s12] sm:$0xff] (!%p1324_p13) }
 0x2c4   : > { %v1098_v4 = vrot.slane (!%p1324_p13), %v1088_v61, %v1097_v3  ;;  %v1105_v5 = vrot.slane (!%p1324_p13), %v1089_v62, %v1097_v3  ;;  %v1112_v10 = vrot.slane (!%p1324_p13), %v1090_v63, %v1097_v3  ;;  %v1119_v12 = vrot.slane (!%p1324_p13), %v1091_v1, %v1097_v3 }
 0x2c6   : > { %v1120_v14 = vcombine.low %v1098_v4, %v1105_v5  ;;  %v1121_v15 = vcombine.low %v1112_v10, %v1119_v12 }
 0x2c8   : > { %v1128_v0 = vrot.slane %v1120_v14, %v1097_v3  ;;  %v1135_v16 = vrot.slane %v1121_v15, %v1097_v3 }
 0x2ca   : > { %v1136_v13 = vcombine.low %v1128_v0, %v1135_v16 }
 0x2cc   : > { %v1138_v6 = vmax.f32 %v1079_v11, %v1136_v13 }
 0x2ce   : > { %1139 = vst [vmem:[%s1798_s12] sm:$0xff] %v1138_v6 }
 0x2cf PF: > { %s1330_s24 = sshll.u32 %s1562_s25, 7  ;;  %s1155_s30 = sshll.u32 %s1798_s12, 4  ;;  %s1156_s30 = int_to_ptr.vmem [resolvable:$true] %s1155_s30 }
 0x2d0   : > { %s1819_s17 = scalar_lea.hbm %s1875_s6, %s1330_s24  ;;  %s1141_s9 = scalar_lea.sflag [#allocation4], %s277_s8 }
 0x2d1   : > { %s1476_s5 = scalar_lea.vmem %s1156_s30, 128  ;;  %p1891_p2 = scmp.ne.s32.totalorder %s1882_s10, 0 }
 0x2d2   : > { %p1477_p0 = scmp.ne.s32.totalorder %s1156_s30, %s1476_s5  ;;  %s1586_s16 = smov [#allocation5]  }
 0x2d3   : > { %s1480_s19 = sshll.u32 %s1586_s16, 4  ;;  %s1481_s19 = int_to_ptr.vmem [resolvable:$false] %s1480_s19 }
 0x2d4   : > { %p1478_p5 = pnand %p1477_p0, %p1891_p2  ;;  %s1482_s20 = scalar_lea.vmem %s1481_s19, 256 }
 0x2d5   : > { %p1483_p7 = scmp.lt.s32.totalorder %s1156_s30, %s1481_s19  ;;  %p1484_p8 = scmp.lt.s32.totalorder %s1482_s20, %s1476_s5 }
 0x2d6   : > { %p1479_p6 = pneg %p1478_p5 }
 0x2d7   : > { %p1485_p11 = por %p1484_p8, %p1483_p7 }
 0x2d9   : > { %p1486_p12 = pnand %p1485_p11, %p1479_p6 }
 0x2db   : > { %1489 = shalt.err (!%p1486_p12)
}
 0x2dc   : > { %s1490_s25 = scalar_lea.hbm %s1819_s17, 128  ;;  %s1494_s13 = scalar_lea.hbm %s1875_s6, 256 }
 0x2dd   : > { %p1491_p1 = scmp.ne.s32.totalorder %s1819_s17, %s1490_s25  ;;  %p1495_p9 = scmp.lt.u32.totalorder %s1819_s17, %s1875_s6 }
 0x2de   : > { %p1496_p10 = scmp.lt.u32.totalorder %s1494_s13, %s1490_s25  ;;  %p1498_p0 = scmp.lt.u32.totalorder %s1490_s25, %s1819_s17 }
 0x2df   : > { %p1492_p4 = pnand %p1491_p1, %p1891_p2 }
 0x2e0   : > { %p1497_p13 = por %p1496_p10, %p1495_p9 }
 0x2e1   : > { %p1493_p3 = pneg %p1492_p4 }
 0x2e2   : > { %p1499_p5 = por %p1498_p0, %p1497_p13 }
 0x2e4   : > { %p1500_p6 = pnand %p1499_p5, %p1493_p3 }
 0x2e6   : > { %1503 = shalt.err (!%p1500_p6)
}
 0x2e7   : > { %1353 = dma.vmem_to_hbm [thread:$0]  (%p1891_p2), %s1156_s30, 128, %s1819_s17, %s1141_s9  }
 0x2e8 PF: > { %p1365_p7 = scmp.ge.s32.totalorder %s1574_s28, 2  ;;  %s1167_s18 = sand.u32 1, %s1546_s21  }
 0x2e9   : > { %p1892_p8 = scmp.ne.s32.totalorder %s1884_s11, 0  ;;  %s1168_s14 = scalar_lea.sflag [#allocation4], %s1167_s18 }
 0x2eb   : > { %p1360_p11 = pnand %p1365_p7, %p1892_p8 }
 0x2ed   : > { %1541 = dma.done.wait (!%p1360_p11), %s1168_s14, 128  }
 0x2ee   : > { %1543 = vsyncadd (!%p1360_p11), %s1168_s14, 4294967168  ;;  %s20_s28 = sadd.s32 1, %s1574_s28   ;;  %s1893_s10 = sld [smem:[#allocation8_spill]] }
 0x2ef   : > { %p17_p12 = scmp.ge.s32.totalorder %s20_s28, 8   ;;  %s1894_s21 = smov %s1550_s22 }
 0x2f0   : > { %s1895_s22 = smov %s1554_s23  ;;  %s1896_s23 = smov %s1699_s15 }
 0x2f1   : > { %s1897_s24 = smov %s1566_s26  ;;  %s1898_s25 = smov %s1570_s27 }
 0x2f2   : > { %s1899_s26 = smov %s1902_s7  ;;  %19 = sbr.rel (!%p17_p12) target bundleno = 8 (0x8), region = 92 }
 0x2f4   : > { %s1900_s27 = smov %s1893_s10 }
 0x2f9   :  { %1173 = vsyncpa [#allocation3], 1 }
 0x2fa   :  { %1175 = vsyncpa [#allocation3 + $0x1], 1 }
 0x2fb   :  { %1176 = vsyncpa [#allocation4], 1 }
 0x2fc   :  { %1178 = vsyncpa [#allocation4 + $0x1], 1 }

</bundles_post_ra>
